<compile_context>
chip_gen: v5e
topology: v5e:2x2
jax: 0.10.0
libtpu: 0.0.40
codegen_flags: <defaults>
</compile_context>

<pallas_src>
import numpy as np
import jax
import jax.numpy as jnp
from jax.experimental import pallas as pl
from jax.experimental.pallas import tpu as pltpu


# ---------------------------------------------------------------------------
# Constant construction (plain numpy, deterministic)
# ---------------------------------------------------------------------------
def _hz_to_mel(f):
    return 2595.0 * np.log10(1.0 + f / 700.0)


def _mel_to_hz(m):
    return 700.0 * (10.0 ** (m / 2595.0) - 1.0)


def melscale_fbanks(n_freqs, f_min, f_max, n_mels):
    """torchaudio.functional.melscale_fbanks (htk, norm=None): (n_freqs, n_mels)."""
    all_freqs = np.linspace(0.0, f_max, n_freqs)
    m_pts = np.linspace(_hz_to_mel(f_min), _hz_to_mel(f_max), n_mels + 2)
    f_pts = _mel_to_hz(m_pts)
    f_diff = f_pts[1:] - f_pts[:-1]
    slopes = f_pts[None, :] - all_freqs[:, None]
    down = -slopes[:, :-2] / f_diff[:-1]
    up = slopes[:, 2:] / f_diff[1:]
    fb = np.maximum(0.0, np.minimum(down, up))
    return fb.astype(np.float32)


def create_dct(n_mfcc, n_mels):
    """torchaudio.functional.create_dct, norm='ortho' (transposed): (n_mfcc, n_mels)."""
    n = np.arange(n_mels, dtype=np.float64)
    k = np.arange(n_mfcc, dtype=np.float64)[:, None]
    dct = np.cos(np.pi / n_mels * (n + 0.5) * k)
    dct[0] *= 1.0 / np.sqrt(2.0)
    dct *= np.sqrt(2.0 / n_mels)
    return dct.astype(np.float32)


def delta_matrix(n_frames, win_length=5):
    """ComputeDeltas (replicate padding) as a right-matmul matrix D: d = x @ D.
    Used only by the pure-JAX reference as an independent check of the in-kernel FIR."""
    n = (win_length - 1) // 2
    denom = n * (n + 1) * (2 * n + 1) / 3.0
    D = np.zeros((n_frames, n_frames), dtype=np.float64)
    t = np.arange(n_frames)
    for k in range(-n, n + 1):
        src = np.clip(t + k, 0, n_frames - 1)
        np.add.at(D, (src, t), k / denom)
    return D.astype(np.float32)


def dft_bases(n_fft, win_length):
    """Hann-windowed real-DFT bases cosT/sinT of shape (n_freq, n_fft); the hann window
    (length win_length, periodic, centered like torch.stft) is folded in."""
    assert win_length <= n_fft
    n = np.arange(win_length, dtype=np.float64)
    hann = 0.5 - 0.5 * np.cos(2.0 * np.pi * n / win_length)
    window = np.zeros(n_fft, dtype=np.float64)
    left = (n_fft - win_length) // 2
    window[left:left + win_length] = hann
    n_freq = n_fft // 2 + 1
    k = np.arange(n_freq, dtype=np.float64)[:, None]
    w = np.arange(n_fft, dtype=np.float64)[None, :]
    ang = 2.0 * np.pi * k * w / n_fft
    cosT = (np.cos(ang) * window[None, :]).astype(np.float32)
    sinT = (np.sin(ang) * window[None, :]).astype(np.float32)
    return cosT, sinT


# ---------------------------------------------------------------------------
# Pallas kernel: per-batch MFCC -> roll-based deltas -> utterance CMVN
# ---------------------------------------------------------------------------
def mfcc_kernel(nf_ref, frames_ref, basis_ref, mel_ref, dct_ref, out_ref):
    n_freq_pad = basis_ref.shape[0] // 2
    C = dct_ref.shape[0]
    f_pad = frames_ref.shape[-1]
    n_valid = nf_ref[0]                                                   # true frame count

    frames = frames_ref[0]                                                # (n_fft, Fp) bf16

    # Fused real+imag DFT: rows [0:nfp] are cos, [nfp:2*nfp] are sin (pad rows are zero).
    spec = jnp.dot(basis_ref[...], frames,
                   preferred_element_type=jnp.float32)                    # (2*nfp, Fp) f32
    re = spec[:n_freq_pad]
    im = spec[n_freq_pad:]
    power = (re * re + im * im).astype(jnp.bfloat16)                      # (nfp, Fp) bf16

    # Mel filterbank (bf16 MXU) -> AmplitudeToDB (power, ref=1.0, top_db=None).
    mels = jnp.dot(mel_ref[...], power,
                   preferred_element_type=jnp.float32)                    # (n_mels, Fp)
    log_mels = (10.0 * jnp.log10(jnp.maximum(mels, 1e-10))).astype(jnp.bfloat16)

    # DCT-II (ortho) -> MFCC coefficients.
    mfcc = jnp.dot(dct_ref[...], log_mels,
                   preferred_element_type=jnp.float32)                    # (C, Fp)

    # ---- deltas: 5-tap ComputeDeltas FIR via pltpu.roll (replicate padding) -----------
    lane = jax.lax.broadcasted_iota(jnp.int32, (1, f_pad), 1)
    valid = lane < n_valid                                                # (1, Fp) bool
    maskf = valid.astype(jnp.float32)
    last_m = (lane == n_valid - 1).astype(jnp.float32)

    def rep_ext(x):
        # Replicate the last valid column into the padded region (cols >= n_valid).
        lastcol = jnp.sum(x * last_m, axis=1, keepdims=True)              # (C, 1)
        return jnp.where(valid, x, lastcol), lastcol

    def fir_delta(x_ext, lastcol):
        # d[t] = sum_{k=1,2} k*(x[t+k] - x[t-k]) / 10 with replicate edge padding.
        left = x_ext[:, 0:1]                                              # x[0]
        acc = None
        for k in (1, 2):
            xm = jnp.where(lane >= k,
                           pltpu.roll(x_ext, shift=k, axis=1), left)       # x[t-k]
            xp = jnp.where(lane < f_pad - k,
                           pltpu.roll(x_ext, shift=f_pad - k, axis=1),
                           lastcol)                                        # x[t+k]
            term = float(k) * (xp - xm)
            acc = term if acc is None else acc + term
        return acc * 0.1

    mfcc_ext, mfcc_last = rep_ext(mfcc)
    d1 = fir_delta(mfcc_ext, mfcc_last)
    d1_ext, d1_last = rep_ext(d1)
    d2 = fir_delta(d1_ext, d1_last)

    # ---- utterance CMVN over the valid frames (unbiased std like torch.std) -----------
    cnt = jnp.sum(maskf, axis=1, keepdims=True)                           # (1, 1) == F
    inv_n = pl.reciprocal(cnt)
    inv_nm1 = pl.reciprocal(jnp.maximum(cnt - 1.0, 1.0))

    def cmvn(x):
        mean = jnp.sum(x * maskf, axis=1, keepdims=True) * inv_n
        cen = (x - mean) * maskf
        var = jnp.sum(cen * cen, axis=1, keepdims=True) * inv_nm1
        return (x - mean) * jax.lax.rsqrt(var + 1e-8)

    # Store directly into sublane-aligned row ranges (no jnp.concatenate).
    out_ref[0, 0:C] = cmvn(mfcc_ext)
    out_ref[0, C:2 * C] = cmvn(d1_ext)
    out_ref[0, 2 * C:3 * C] = cmvn(d2)


# ---------------------------------------------------------------------------
# Wrapper
# ---------------------------------------------------------------------------
class MFCCPallas:
    def __init__(self, args):
        self.n_mfcc = args['n_mfcc']
        self.delta = args['delta']
        self.utt_regularization = args['utt_regularization']
        self.sample_rate = args['sample_rate']
        self.win_length_samples = int(self.sample_rate * 0.001 * args['win_length'])
        self.hop_length_samples = int(self.sample_rate * 0.001 * args['hop_length'])
        self.n_fft = args['n_fft']
        self.n_mels = args['n_mels']
        self.n_freq = self.n_fft // 2 + 1
        self.n_freq_pad = ((self.n_freq + 7) // 8) * 8     # aligned re/im sublane slices

        assert self.delta and self.utt_regularization, \
            "this kernel implements the full (delta + utt_regularization) path"

        cosT, sinT = dft_bases(self.n_fft, self.win_length_samples)
        basis = np.zeros((2 * self.n_freq_pad, self.n_fft), np.float32)
        basis[:self.n_freq] = cosT
        basis[self.n_freq_pad:self.n_freq_pad + self.n_freq] = sinT
        self.basis = jnp.asarray(basis, dtype=jnp.bfloat16)               # (2*nfp, n_fft)

        melT = melscale_fbanks(self.n_freq, 0.0, self.sample_rate / 2.0, self.n_mels).T
        mel_pad = np.zeros((self.n_mels, self.n_freq_pad), np.float32)
        mel_pad[:, :self.n_freq] = melT
        self.mel_w = jnp.asarray(mel_pad, dtype=jnp.bfloat16)             # (n_mels, nfp)
        self.dct_w = jnp.asarray(create_dct(self.n_mfcc, self.n_mels),
                                 dtype=jnp.bfloat16)                      # (C, n_mels)

    # --- framing: center=True reflect padding, frames padded to a lane-dense Fp ---------
    def _frame(self, x):
        pad = self.n_fft // 2
        padded = jnp.pad(x, ((0, 0), (pad, pad)), mode='reflect')
        n_frames = x.shape[1] // self.hop_length_samples + 1
        idx = (jnp.arange(self.n_fft)[:, None]
               + jnp.arange(n_frames)[None, :] * self.hop_length_samples)  # (n_fft, F)
        frames = padded[:, idx]                                            # (B, n_fft, F)
        f_pad = max(128, ((n_frames + 127) // 128) * 128)
        frames = jnp.pad(frames, ((0, 0), (0, 0), (0, f_pad - n_frames)))
        return frames.astype(jnp.bfloat16), n_frames, f_pad

    def _vmem_limit(self, f_pad):
        nfp, n_fft, n_mels, C = self.n_freq_pad, self.n_fft, self.n_mels, self.n_mfcc
        frames_b = 2 * n_fft * f_pad * 2                                  # double-buffered bf16
        weights_b = 2 * (2 * nfp * n_fft + n_mels * nfp + C * n_mels) * 2
        out_b = 2 * 3 * C * f_pad * 4
        inter_b = (3 * 2 * nfp + 3 * n_mels + 14 * C) * f_pad * 4
        est = int(1.3 * (frames_b + weights_b + out_b + inter_b)) + (2 << 20)
        return int(min(max(est, 32 << 20), 64 << 20))                     # v7x physical = 64 MiB

    def __call__(self, x):
        x = jnp.asarray(x, jnp.float32)
        B = x.shape[0]
        frames, F, Fp = self._frame(x)                                     # (B, n_fft, Fp) bf16
        n_valid = jnp.array([F], dtype=jnp.int32)                          # SMEM scalar (no
                                                                           # recompile per length)
        C = self.n_mfcc
        n_fft, nfp, n_mels = self.n_fft, self.n_freq_pad, self.n_mels

        flops = B * (2 * (2 * nfp) * n_fft * Fp       # DFT matmul
                     + 2 * n_mels * nfp * Fp          # mel matmul
                     + 2 * C * n_mels * Fp            # DCT
                     + 20 * C * Fp                    # FIR deltas
                     + 12 * (3 * C) * Fp)             # elementwise / CMVN
        transcendentals = B * (n_mels * Fp + 3 * C)
        bytes_accessed = (B * n_fft * Fp * 2                               # frames (bf16)
                          + (2 * nfp * n_fft + n_mels * nfp + C * n_mels) * 2
                          + B * 3 * C * Fp * 4 + 4)

        out = pl.pallas_call(
            mfcc_kernel,
            out_shape=jax.ShapeDtypeStruct((B, 3 * C, Fp), jnp.float32),
            grid_spec=pltpu.PrefetchScalarGridSpec(
                num_scalar_prefetch=1,
                grid=(B,),
                in_specs=[
                    pl.BlockSpec((1, n_fft, Fp), lambda b, nf: (b, 0, 0)),
                    pl.BlockSpec((2 * nfp, n_fft), lambda b, nf: (0, 0)),
                    pl.BlockSpec((n_mels, nfp), lambda b, nf: (0, 0)),
                    pl.BlockSpec((C, n_mels), lambda b, nf: (0, 0)),
                ],
                out_specs=pl.BlockSpec((1, 3 * C, Fp), lambda b, nf: (b, 0, 0)),
            ),
            compiler_params=pltpu.CompilerParams(
                dimension_semantics=("parallel",),
                vmem_limit_bytes=self._vmem_limit(Fp)),
            cost_estimate=pl.CostEstimate(
                flops=int(flops),
                transcendentals=int(transcendentals),
                bytes_accessed=int(bytes_accessed)),
        )(n_valid, frames, self.basis, self.mel_w, self.dct_w)
        return out[:, :, :F]

    # Pure-JAX reference (same math; bf16 rounding applied at the same points so the
    # comparison checks the Pallas plumbing + the FIR-vs-matrix delta equivalence).
    def reference(self, x):
        x = jnp.asarray(x, jnp.float32)
        pad = self.n_fft // 2
        padded = jnp.pad(x, ((0, 0), (pad, pad)), mode='reflect')
        F = x.shape[1] // self.hop_length_samples + 1
        idx = (jnp.arange(self.n_fft)[:, None]
               + jnp.arange(F)[None, :] * self.hop_length_samples)
        frames = padded[:, idx].astype(jnp.bfloat16).astype(jnp.float32)   # (B, n_fft, F)
        nfp = self.n_freq_pad
        basis = self.basis.astype(jnp.float32)
        spec = jnp.einsum('kw,bwf->bkf', basis, frames)
        re, im = spec[:, :nfp], spec[:, nfp:]
        power = (re * re + im * im).astype(jnp.bfloat16).astype(jnp.float32)
        mels = jnp.einsum('mk,bkf->bmf', self.mel_w.astype(jnp.float32), power)
        log_mels = (10.0 * jnp.log10(jnp.maximum(mels, 1e-10))
                    ).astype(jnp.bfloat16).astype(jnp.float32)
        mfcc = jnp.einsum('cm,bmf->bcf', self.dct_w.astype(jnp.float32), log_mels)
        D = jnp.asarray(delta_matrix(F))
        d1 = jnp.einsum('bcf,fg->bcg', mfcc, D)
        d2 = jnp.einsum('bcf,fg->bcg', d1, D)
        feat = jnp.concatenate([mfcc, d1, d2], axis=1)
        mean = feat.mean(axis=-1, keepdims=True)
        var = ((feat - mean) ** 2).sum(axis=-1, keepdims=True) / max(F - 1, 1)
        return (feat - mean) * jax.lax.rsqrt(var + 1e-8)


if __name__ == "__main__":
    args = {
        'n_mfcc': 8,
        'delta': True,
        'utt_regularization': True,
        'sample_rate': 16000,
        'win_length': 4,      # ms -> 64 samples
        'hop_length': 2,      # ms -> 32 samples
        'n_fft': 64,
        'n_mels': 16,
    }
    B, T = 2, 512
    key = jax.random.PRNGKey(0)
    x = jax.random.normal(key, (B, T), dtype=jnp.float32)

    model = MFCCPallas(args)
    out = jax.block_until_ready(model(x))

    F = T // model.hop_length_samples + 1
    assert out.shape == (B, 3 * args['n_mfcc'], F), out.shape
    assert bool(jnp.all(jnp.isfinite(out)))

    ref = jax.block_until_ready(model.reference(x))
    max_err = float(jnp.max(jnp.abs(out - ref)))
    assert max_err < 0.1, f"max abs err vs reference: {max_err}"

    print("KERNEL_OK")
</pallas_src>

<mosaic_0001>
module attributes {stable_mosaic.version = 11 : i64} {
  func.func @mfcc_kernel(%arg0: i32, %arg1: memref<1xi32, #tpu.memory_space<smem>>, %arg2: memref<1x64x128xbf16, #tpu.memory_space<vmem>>, %arg3: memref<80x64xbf16, #tpu.memory_space<vmem>>, %arg4: memref<16x40xbf16, #tpu.memory_space<vmem>>, %arg5: memref<8x16xbf16, #tpu.memory_space<vmem>>, %arg6: memref<1x24x128xf32, #tpu.memory_space<vmem>>) attributes {dimension_semantics = [#tpu.dimension_semantics<parallel>], iteration_bounds = array<i64: 2>, scalar_prefetch = 1 : i64, scratch_operands = 0 : i64, tpu.core_type = #tpu.core_type<tc>, window_params = [{transform_indices = @transform_0, window_bounds = array<i64: 1, 64, 128>}, {pipeline_mode = #tpu.pipeline_mode<synchronous>, transform_indices = @transform_1, window_bounds = array<i64: 80, 64>}, {pipeline_mode = #tpu.pipeline_mode<synchronous>, transform_indices = @transform_2, window_bounds = array<i64: 16, 40>}, {pipeline_mode = #tpu.pipeline_mode<synchronous>, transform_indices = @transform_3, window_bounds = array<i64: 8, 16>}, {transform_indices = @transform_4, window_bounds = array<i64: 1, 24, 128>}]} {
    %c0 = arith.constant 0 : index
    %0 = memref.load %arg1[%c0] : memref<1xi32, #tpu.memory_space<smem>>
    %c0_0 = arith.constant 0 : index
    %c0_1 = arith.constant 0 : index
    %c0_2 = arith.constant 0 : index
    %1 = vector.load %arg2[%c0_0, %c0_1, %c0_2] : memref<1x64x128xbf16, #tpu.memory_space<vmem>>, vector<1x64x128xbf16>
    %2 = vector.shape_cast %1 : vector<1x64x128xbf16> to vector<64x128xbf16>
    %c0_3 = arith.constant 0 : index
    %c0_4 = arith.constant 0 : index
    %3 = vector.load %arg3[%c0_3, %c0_4] : memref<80x64xbf16, #tpu.memory_space<vmem>>, vector<80x64xbf16>
    %cst = arith.constant dense<0.000000e+00> : vector<80x128xf32>
    %4 = tpu.matmul %3, %2, %cst {dimension_numbers = #tpu.dot_dimension_numbers<[1], [0], [0], [1], [0, 0, 1, 1], [], []>} : vector<80x64xbf16>, vector<64x128xbf16>, vector<80x128xf32> -> vector<80x128xf32>
    %5 = vector.extract_strided_slice %4 {offsets = [0, 0], sizes = [40, 128], strides = [1, 1]} : vector<80x128xf32> to vector<40x128xf32>
    %6 = vector.extract_strided_slice %4 {offsets = [40, 0], sizes = [40, 128], strides = [1, 1]} : vector<80x128xf32> to vector<40x128xf32>
    %7 = arith.mulf %5, %5 : vector<40x128xf32>
    %8 = arith.mulf %6, %6 : vector<40x128xf32>
    %9 = arith.addf %7, %8 : vector<40x128xf32>
    %10 = arith.truncf %9 : vector<40x128xf32> to vector<40x128xbf16>
    %c0_5 = arith.constant 0 : index
    %c0_6 = arith.constant 0 : index
    %11 = vector.load %arg4[%c0_5, %c0_6] : memref<16x40xbf16, #tpu.memory_space<vmem>>, vector<16x40xbf16>
    %cst_7 = arith.constant dense<0.000000e+00> : vector<16x128xf32>
    %12 = tpu.matmul %11, %10, %cst_7 {dimension_numbers = #tpu.dot_dimension_numbers<[1], [0], [0], [1], [0, 0, 1, 1], [], []>} : vector<16x40xbf16>, vector<40x128xbf16>, vector<16x128xf32> -> vector<16x128xf32>
    %cst_8 = arith.constant 1.000000e-10 : f32
    %13 = vector.broadcast %cst_8 : f32 to vector<16x128xf32>
    %14 = arith.maximumf %12, %13 : vector<16x128xf32>
    %15 = math.log %14 : vector<16x128xf32>
    %cst_9 = arith.constant 0.434294492 : f32
    %16 = vector.broadcast %cst_9 : f32 to vector<16x128xf32>
    %17 = arith.mulf %15, %16 : vector<16x128xf32>
    %cst_10 = arith.constant 1.000000e+01 : f32
    %18 = vector.broadcast %cst_10 : f32 to vector<16x128xf32>
    %19 = arith.mulf %18, %17 : vector<16x128xf32>
    %20 = arith.truncf %19 : vector<16x128xf32> to vector<16x128xbf16>
    %c0_11 = arith.constant 0 : index
    %c0_12 = arith.constant 0 : index
    %21 = vector.load %arg5[%c0_11, %c0_12] : memref<8x16xbf16, #tpu.memory_space<vmem>>, vector<8x16xbf16>
    %cst_13 = arith.constant dense<0.000000e+00> : vector<8x128xf32>
    %22 = tpu.matmul %21, %20, %cst_13 {dimension_numbers = #tpu.dot_dimension_numbers<[1], [0], [0], [1], [0, 0, 1, 1], [], []>} : vector<8x16xbf16>, vector<16x128xbf16>, vector<8x128xf32> -> vector<8x128xf32>
    %23 = tpu.iota {dimensions = array<i32: 1>} : vector<1x128xi32>
    %24 = vector.broadcast %0 : i32 to vector<1x128xi32>
    %25 = arith.cmpi slt, %23, %24 : vector<1x128xi32>
    %26 = arith.extui %25 : vector<1x128xi1> to vector<1x128xi32>
    %27 = arith.sitofp %26 : vector<1x128xi32> to vector<1x128xf32>
    %c1_i32 = arith.constant 1 : i32
    %28 = arith.subi %0, %c1_i32 : i32
    %29 = vector.broadcast %28 : i32 to vector<1x128xi32>
    %30 = arith.cmpi eq, %23, %29 : vector<1x128xi32>
    %31 = arith.extui %30 : vector<1x128xi1> to vector<1x128xi32>
    %32 = arith.sitofp %31 : vector<1x128xi32> to vector<1x128xf32>
    %33 = vector.broadcast %32 : vector<1x128xf32> to vector<8x128xf32>
    %34 = arith.mulf %22, %33 : vector<8x128xf32>
    %cst_14 = arith.constant dense<0.000000e+00> : vector<8xf32>
    %35 = vector.multi_reduction <add>, %34, %cst_14 [1] : vector<8x128xf32> to vector<8xf32>
    %36 = vector.shape_cast %35 : vector<8xf32> to vector<8x1xf32>
    %37 = vector.shape_cast %25 : vector<1x128xi1> to vector<1x128xi1>
    %38 = vector.broadcast %37 : vector<1x128xi1> to vector<8x128xi1>
    %39 = vector.shape_cast %36 : vector<8x1xf32> to vector<8x1xf32>
    %40 = vector.broadcast %39 : vector<8x1xf32> to vector<8x128xf32>
    %41 = arith.select %38, %22, %40 : vector<8x128xi1>, vector<8x128xf32>
    %42 = vector.extract_strided_slice %41 {offsets = [0, 0], sizes = [8, 1], strides = [1, 1]} : vector<8x128xf32> to vector<8x1xf32>
    %c1_i32_15 = arith.constant 1 : i32
    %43 = vector.broadcast %c1_i32_15 : i32 to vector<1x128xi32>
    %44 = arith.cmpi sge, %23, %43 : vector<1x128xi32>
    %c1_i32_16 = arith.constant 1 : i32
    %45 = tpu.dynamic_rotate %41 by %c1_i32_16 dim 1 : vector<8x128xf32>, i32 -> vector<8x128xf32>
    %46 = vector.shape_cast %44 : vector<1x128xi1> to vector<1x128xi1>
    %47 = vector.broadcast %46 : vector<1x128xi1> to vector<8x128xi1>
    %48 = vector.shape_cast %42 : vector<8x1xf32> to vector<8x1xf32>
    %49 = vector.broadcast %48 : vector<8x1xf32> to vector<8x128xf32>
    %50 = arith.select %47, %45, %49 : vector<8x128xi1>, vector<8x128xf32>
    %c127_i32 = arith.constant 127 : i32
    %51 = vector.broadcast %c127_i32 : i32 to vector<1x128xi32>
    %52 = arith.cmpi slt, %23, %51 : vector<1x128xi32>
    %c127_i32_17 = arith.constant 127 : i32
    %53 = tpu.dynamic_rotate %41 by %c127_i32_17 dim 1 : vector<8x128xf32>, i32 -> vector<8x128xf32>
    %54 = vector.shape_cast %52 : vector<1x128xi1> to vector<1x128xi1>
    %55 = vector.broadcast %54 : vector<1x128xi1> to vector<8x128xi1>
    %56 = vector.shape_cast %36 : vector<8x1xf32> to vector<8x1xf32>
    %57 = vector.broadcast %56 : vector<8x1xf32> to vector<8x128xf32>
    %58 = arith.select %55, %53, %57 : vector<8x128xi1>, vector<8x128xf32>
    %59 = arith.subf %58, %50 : vector<8x128xf32>
    %cst_18 = arith.constant 1.000000e+00 : f32
    %60 = vector.broadcast %cst_18 : f32 to vector<8x128xf32>
    %61 = arith.mulf %60, %59 : vector<8x128xf32>
    %c2_i32 = arith.constant 2 : i32
    %62 = vector.broadcast %c2_i32 : i32 to vector<1x128xi32>
    %63 = arith.cmpi sge, %23, %62 : vector<1x128xi32>
    %c2_i32_19 = arith.constant 2 : i32
    %64 = tpu.dynamic_rotate %41 by %c2_i32_19 dim 1 : vector<8x128xf32>, i32 -> vector<8x128xf32>
    %65 = vector.shape_cast %63 : vector<1x128xi1> to vector<1x128xi1>
    %66 = vector.broadcast %65 : vector<1x128xi1> to vector<8x128xi1>
    %67 = vector.shape_cast %42 : vector<8x1xf32> to vector<8x1xf32>
    %68 = vector.broadcast %67 : vector<8x1xf32> to vector<8x128xf32>
    %69 = arith.select %66, %64, %68 : vector<8x128xi1>, vector<8x128xf32>
    %c126_i32 = arith.constant 126 : i32
    %70 = vector.broadcast %c126_i32 : i32 to vector<1x128xi32>
    %71 = arith.cmpi slt, %23, %70 : vector<1x128xi32>
    %c126_i32_20 = arith.constant 126 : i32
    %72 = tpu.dynamic_rotate %41 by %c126_i32_20 dim 1 : vector<8x128xf32>, i32 -> vector<8x128xf32>
    %73 = vector.shape_cast %71 : vector<1x128xi1> to vector<1x128xi1>
    %74 = vector.broadcast %73 : vector<1x128xi1> to vector<8x128xi1>
    %75 = vector.shape_cast %36 : vector<8x1xf32> to vector<8x1xf32>
    %76 = vector.broadcast %75 : vector<8x1xf32> to vector<8x128xf32>
    %77 = arith.select %74, %72, %76 : vector<8x128xi1>, vector<8x128xf32>
    %78 = arith.subf %77, %69 : vector<8x128xf32>
    %cst_21 = arith.constant 2.000000e+00 : f32
    %79 = vector.broadcast %cst_21 : f32 to vector<8x128xf32>
    %80 = arith.mulf %79, %78 : vector<8x128xf32>
    %81 = arith.addf %61, %80 : vector<8x128xf32>
    %cst_22 = arith.constant 1.000000e-01 : f32
    %82 = vector.broadcast %cst_22 : f32 to vector<8x128xf32>
    %83 = arith.mulf %81, %82 : vector<8x128xf32>
    %84 = vector.broadcast %32 : vector<1x128xf32> to vector<8x128xf32>
    %85 = arith.mulf %83, %84 : vector<8x128xf32>
    %cst_23 = arith.constant dense<0.000000e+00> : vector<8xf32>
    %86 = vector.multi_reduction <add>, %85, %cst_23 [1] : vector<8x128xf32> to vector<8xf32>
    %87 = vector.shape_cast %86 : vector<8xf32> to vector<8x1xf32>
    %88 = vector.shape_cast %25 : vector<1x128xi1> to vector<1x128xi1>
    %89 = vector.broadcast %88 : vector<1x128xi1> to vector<8x128xi1>
    %90 = vector.shape_cast %87 : vector<8x1xf32> to vector<8x1xf32>
    %91 = vector.broadcast %90 : vector<8x1xf32> to vector<8x128xf32>
    %92 = arith.select %89, %83, %91 : vector<8x128xi1>, vector<8x128xf32>
    %93 = vector.extract_strided_slice %92 {offsets = [0, 0], sizes = [8, 1], strides = [1, 1]} : vector<8x128xf32> to vector<8x1xf32>
    %c1_i32_24 = arith.constant 1 : i32
    %94 = vector.broadcast %c1_i32_24 : i32 to vector<1x128xi32>
    %95 = arith.cmpi sge, %23, %94 : vector<1x128xi32>
    %c1_i32_25 = arith.constant 1 : i32
    %96 = tpu.dynamic_rotate %92 by %c1_i32_25 dim 1 : vector<8x128xf32>, i32 -> vector<8x128xf32>
    %97 = vector.shape_cast %95 : vector<1x128xi1> to vector<1x128xi1>
    %98 = vector.broadcast %97 : vector<1x128xi1> to vector<8x128xi1>
    %99 = vector.shape_cast %93 : vector<8x1xf32> to vector<8x1xf32>
    %100 = vector.broadcast %99 : vector<8x1xf32> to vector<8x128xf32>
    %101 = arith.select %98, %96, %100 : vector<8x128xi1>, vector<8x128xf32>
    %c127_i32_26 = arith.constant 127 : i32
    %102 = vector.broadcast %c127_i32_26 : i32 to vector<1x128xi32>
    %103 = arith.cmpi slt, %23, %102 : vector<1x128xi32>
    %c127_i32_27 = arith.constant 127 : i32
    %104 = tpu.dynamic_rotate %92 by %c127_i32_27 dim 1 : vector<8x128xf32>, i32 -> vector<8x128xf32>
    %105 = vector.shape_cast %103 : vector<1x128xi1> to vector<1x128xi1>
    %106 = vector.broadcast %105 : vector<1x128xi1> to vector<8x128xi1>
    %107 = vector.shape_cast %87 : vector<8x1xf32> to vector<8x1xf32>
    %108 = vector.broadcast %107 : vector<8x1xf32> to vector<8x128xf32>
    %109 = arith.select %106, %104, %108 : vector<8x128xi1>, vector<8x128xf32>
    %110 = arith.subf %109, %101 : vector<8x128xf32>
    %cst_28 = arith.constant 1.000000e+00 : f32
    %111 = vector.broadcast %cst_28 : f32 to vector<8x128xf32>
    %112 = arith.mulf %111, %110 : vector<8x128xf32>
    %c2_i32_29 = arith.constant 2 : i32
    %113 = vector.broadcast %c2_i32_29 : i32 to vector<1x128xi32>
    %114 = arith.cmpi sge, %23, %113 : vector<1x128xi32>
    %c2_i32_30 = arith.constant 2 : i32
    %115 = tpu.dynamic_rotate %92 by %c2_i32_30 dim 1 : vector<8x128xf32>, i32 -> vector<8x128xf32>
    %116 = vector.shape_cast %114 : vector<1x128xi1> to vector<1x128xi1>
    %117 = vector.broadcast %116 : vector<1x128xi1> to vector<8x128xi1>
    %118 = vector.shape_cast %93 : vector<8x1xf32> to vector<8x1xf32>
    %119 = vector.broadcast %118 : vector<8x1xf32> to vector<8x128xf32>
    %120 = arith.select %117, %115, %119 : vector<8x128xi1>, vector<8x128xf32>
    %c126_i32_31 = arith.constant 126 : i32
    %121 = vector.broadcast %c126_i32_31 : i32 to vector<1x128xi32>
    %122 = arith.cmpi slt, %23, %121 : vector<1x128xi32>
    %c126_i32_32 = arith.constant 126 : i32
    %123 = tpu.dynamic_rotate %92 by %c126_i32_32 dim 1 : vector<8x128xf32>, i32 -> vector<8x128xf32>
    %124 = vector.shape_cast %122 : vector<1x128xi1> to vector<1x128xi1>
    %125 = vector.broadcast %124 : vector<1x128xi1> to vector<8x128xi1>
    %126 = vector.shape_cast %87 : vector<8x1xf32> to vector<8x1xf32>
    %127 = vector.broadcast %126 : vector<8x1xf32> to vector<8x128xf32>
    %128 = arith.select %125, %123, %127 : vector<8x128xi1>, vector<8x128xf32>
    %129 = arith.subf %128, %120 : vector<8x128xf32>
    %cst_33 = arith.constant 2.000000e+00 : f32
    %130 = vector.broadcast %cst_33 : f32 to vector<8x128xf32>
    %131 = arith.mulf %130, %129 : vector<8x128xf32>
    %132 = arith.addf %112, %131 : vector<8x128xf32>
    %cst_34 = arith.constant 1.000000e-01 : f32
    %133 = vector.broadcast %cst_34 : f32 to vector<8x128xf32>
    %134 = arith.mulf %132, %133 : vector<8x128xf32>
    %cst_35 = arith.constant dense<0.000000e+00> : vector<1xf32>
    %135 = vector.multi_reduction <add>, %27, %cst_35 [1] : vector<1x128xf32> to vector<1xf32>
    %136 = vector.shape_cast %135 : vector<1xf32> to vector<1x1xf32>
    %137 = tpu.reciprocal %136 : vector<1x1xf32> -> vector<1x1xf32>
    %cst_36 = arith.constant 1.000000e+00 : f32
    %138 = vector.broadcast %cst_36 : f32 to vector<1x1xf32>
    %139 = arith.subf %136, %138 : vector<1x1xf32>
    %cst_37 = arith.constant 1.000000e+00 : f32
    %140 = vector.broadcast %cst_37 : f32 to vector<1x1xf32>
    %141 = arith.maximumf %139, %140 : vector<1x1xf32>
    %142 = tpu.reciprocal %141 : vector<1x1xf32> -> vector<1x1xf32>
    %143 = vector.broadcast %27 : vector<1x128xf32> to vector<8x128xf32>
    %144 = arith.mulf %41, %143 : vector<8x128xf32>
    %cst_38 = arith.constant dense<0.000000e+00> : vector<8xf32>
    %145 = vector.multi_reduction <add>, %144, %cst_38 [1] : vector<8x128xf32> to vector<8xf32>
    %146 = vector.shape_cast %145 : vector<8xf32> to vector<8x1xf32>
    %147 = vector.broadcast %137 : vector<1x1xf32> to vector<8x1xf32>
    %148 = arith.mulf %146, %147 : vector<8x1xf32>
    %149 = vector.broadcast %148 : vector<8x1xf32> to vector<8x128xf32>
    %150 = arith.subf %41, %149 : vector<8x128xf32>
    %151 = vector.broadcast %27 : vector<1x128xf32> to vector<8x128xf32>
    %152 = arith.mulf %150, %151 : vector<8x128xf32>
    %153 = arith.mulf %152, %152 : vector<8x128xf32>
    %cst_39 = arith.constant dense<0.000000e+00> : vector<8xf32>
    %154 = vector.multi_reduction <add>, %153, %cst_39 [1] : vector<8x128xf32> to vector<8xf32>
    %155 = vector.shape_cast %154 : vector<8xf32> to vector<8x1xf32>
    %156 = vector.broadcast %142 : vector<1x1xf32> to vector<8x1xf32>
    %157 = arith.mulf %155, %156 : vector<8x1xf32>
    %158 = vector.broadcast %148 : vector<8x1xf32> to vector<8x128xf32>
    %159 = arith.subf %41, %158 : vector<8x128xf32>
    %cst_40 = arith.constant 9.99999993E-9 : f32
    %160 = vector.broadcast %cst_40 : f32 to vector<8x1xf32>
    %161 = arith.addf %157, %160 : vector<8x1xf32>
    %162 = math.rsqrt %161 : vector<8x1xf32>
    %163 = vector.broadcast %162 : vector<8x1xf32> to vector<8x128xf32>
    %164 = arith.mulf %159, %163 : vector<8x128xf32>
    %c0_41 = arith.constant 0 : index
    %c0_42 = arith.constant 0 : index
    %c0_43 = arith.constant 0 : index
    %165 = vector.load %arg6[%c0_41, %c0_42, %c0_43] : memref<1x24x128xf32, #tpu.memory_space<vmem>>, vector<1x8x128xf32>
    %166 = vector.shape_cast %165 : vector<1x8x128xf32> to vector<8x128xf32>
    %167 = vector.shape_cast %164 : vector<8x128xf32> to vector<1x8x128xf32>
    tpu.vector_store %arg6[%c0_41, %c0_42, %c0_43], %167 {strides = array<i32>} : memref<1x24x128xf32, #tpu.memory_space<vmem>>, vector<1x8x128xf32>,
    %168 = vector.broadcast %27 : vector<1x128xf32> to vector<8x128xf32>
    %169 = arith.mulf %92, %168 : vector<8x128xf32>
    %cst_44 = arith.constant dense<0.000000e+00> : vector<8xf32>
    %170 = vector.multi_reduction <add>, %169, %cst_44 [1] : vector<8x128xf32> to vector<8xf32>
    %171 = vector.shape_cast %170 : vector<8xf32> to vector<8x1xf32>
    %172 = vector.broadcast %137 : vector<1x1xf32> to vector<8x1xf32>
    %173 = arith.mulf %171, %172 : vector<8x1xf32>
    %174 = vector.broadcast %173 : vector<8x1xf32> to vector<8x128xf32>
    %175 = arith.subf %92, %174 : vector<8x128xf32>
    %176 = vector.broadcast %27 : vector<1x128xf32> to vector<8x128xf32>
    %177 = arith.mulf %175, %176 : vector<8x128xf32>
    %178 = arith.mulf %177, %177 : vector<8x128xf32>
    %cst_45 = arith.constant dense<0.000000e+00> : vector<8xf32>
    %179 = vector.multi_reduction <add>, %178, %cst_45 [1] : vector<8x128xf32> to vector<8xf32>
    %180 = vector.shape_cast %179 : vector<8xf32> to vector<8x1xf32>
    %181 = vector.broadcast %142 : vector<1x1xf32> to vector<8x1xf32>
    %182 = arith.mulf %180, %181 : vector<8x1xf32>
    %183 = vector.broadcast %173 : vector<8x1xf32> to vector<8x128xf32>
    %184 = arith.subf %92, %183 : vector<8x128xf32>
    %cst_46 = arith.constant 9.99999993E-9 : f32
    %185 = vector.broadcast %cst_46 : f32 to vector<8x1xf32>
    %186 = arith.addf %182, %185 : vector<8x1xf32>
    %187 = math.rsqrt %186 : vector<8x1xf32>
    %188 = vector.broadcast %187 : vector<8x1xf32> to vector<8x128xf32>
    %189 = arith.mulf %184, %188 : vector<8x128xf32>
    %c0_47 = arith.constant 0 : index
    %c8 = arith.constant 8 : index
    %c0_48 = arith.constant 0 : index
    %190 = vector.load %arg6[%c0_47, %c8, %c0_48] : memref<1x24x128xf32, #tpu.memory_space<vmem>>, vector<1x8x128xf32>
    %191 = vector.shape_cast %190 : vector<1x8x128xf32> to vector<8x128xf32>
    %192 = vector.shape_cast %189 : vector<8x128xf32> to vector<1x8x128xf32>
    tpu.vector_store %arg6[%c0_47, %c8, %c0_48], %192 {strides = array<i32>} : memref<1x24x128xf32, #tpu.memory_space<vmem>>, vector<1x8x128xf32>,
    %193 = vector.broadcast %27 : vector<1x128xf32> to vector<8x128xf32>
    %194 = arith.mulf %134, %193 : vector<8x128xf32>
    %cst_49 = arith.constant dense<0.000000e+00> : vector<8xf32>
    %195 = vector.multi_reduction <add>, %194, %cst_49 [1] : vector<8x128xf32> to vector<8xf32>
    %196 = vector.shape_cast %195 : vector<8xf32> to vector<8x1xf32>
    %197 = vector.broadcast %137 : vector<1x1xf32> to vector<8x1xf32>
    %198 = arith.mulf %196, %197 : vector<8x1xf32>
    %199 = vector.broadcast %198 : vector<8x1xf32> to vector<8x128xf32>
    %200 = arith.subf %134, %199 : vector<8x128xf32>
    %201 = vector.broadcast %27 : vector<1x128xf32> to vector<8x128xf32>
    %202 = arith.mulf %200, %201 : vector<8x128xf32>
    %203 = arith.mulf %202, %202 : vector<8x128xf32>
    %cst_50 = arith.constant dense<0.000000e+00> : vector<8xf32>
    %204 = vector.multi_reduction <add>, %203, %cst_50 [1] : vector<8x128xf32> to vector<8xf32>
    %205 = vector.shape_cast %204 : vector<8xf32> to vector<8x1xf32>
    %206 = vector.broadcast %142 : vector<1x1xf32> to vector<8x1xf32>
    %207 = arith.mulf %205, %206 : vector<8x1xf32>
    %208 = vector.broadcast %198 : vector<8x1xf32> to vector<8x128xf32>
    %209 = arith.subf %134, %208 : vector<8x128xf32>
    %cst_51 = arith.constant 9.99999993E-9 : f32
    %210 = vector.broadcast %cst_51 : f32 to vector<8x1xf32>
    %211 = arith.addf %207, %210 : vector<8x1xf32>
    %212 = math.rsqrt %211 : vector<8x1xf32>
    %213 = vector.broadcast %212 : vector<8x1xf32> to vector<8x128xf32>
    %214 = arith.mulf %209, %213 : vector<8x128xf32>
    %c0_52 = arith.constant 0 : index
    %c16 = arith.constant 16 : index
    %c0_53 = arith.constant 0 : index
    %215 = vector.load %arg6[%c0_52, %c16, %c0_53] : memref<1x24x128xf32, #tpu.memory_space<vmem>>, vector<1x8x128xf32>
    %216 = vector.shape_cast %215 : vector<1x8x128xf32> to vector<8x128xf32>
    %217 = vector.shape_cast %214 : vector<8x128xf32> to vector<1x8x128xf32>
    tpu.vector_store %arg6[%c0_52, %c16, %c0_53], %217 {strides = array<i32>} : memref<1x24x128xf32, #tpu.memory_space<vmem>>, vector<1x8x128xf32>,
    return
  }
  func.func @transform_0(%arg0: i32, %arg1: memref<1xi32, #tpu.memory_space<smem>>) -> (i32, i32, i32) {
    %c0_i32 = arith.constant 0 : i32
    %c0_i32_0 = arith.constant 0 : i32
    %c0_i32_1 = arith.constant 0 : i32
    return %arg0, %c0_i32, %c0_i32_0 : i32, i32, i32
  }
  func.func @transform_1(%arg0: i32, %arg1: memref<1xi32, #tpu.memory_space<smem>>) -> (i32, i32) {
    %c0_i32 = arith.constant 0 : i32
    %c0_i32_0 = arith.constant 0 : i32
    %c0_i32_1 = arith.constant 0 : i32
    return %c0_i32, %c0_i32_0 : i32, i32
  }
  func.func @transform_2(%arg0: i32, %arg1: memref<1xi32, #tpu.memory_space<smem>>) -> (i32, i32) {
    %c0_i32 = arith.constant 0 : i32
    %c0_i32_0 = arith.constant 0 : i32
    %c0_i32_1 = arith.constant 0 : i32
    return %c0_i32, %c0_i32_0 : i32, i32
  }
  func.func @transform_3(%arg0: i32, %arg1: memref<1xi32, #tpu.memory_space<smem>>) -> (i32, i32) {
    %c0_i32 = arith.constant 0 : i32
    %c0_i32_0 = arith.constant 0 : i32
    %c0_i32_1 = arith.constant 0 : i32
    return %c0_i32, %c0_i32_0 : i32, i32
  }
  func.func @transform_4(%arg0: i32, %arg1: memref<1xi32, #tpu.memory_space<smem>>) -> (i32, i32, i32) {
    %c0_i32 = arith.constant 0 : i32
    %c0_i32_0 = arith.constant 0 : i32
    %c0_i32_1 = arith.constant 0 : i32
    return %arg0, %c0_i32, %c0_i32_0 : i32, i32, i32
  }
}

</mosaic_0001>

<bundles_post_ra>
// kernel: tpu_custom_call.1
= control target key start
LH: loop header
LB: loop body
LE: loop exit
PB: predicated region body
PF: predicated region fallthrough
CT: control target
= control target key end

     0   :  { %s1066_s0 = inlined_call_operand.<no memory space> [shape: s32[1], index: 0, kind: input, shape index: {}]   ;;  %s1067_s1 = inlined_call_operand.vmem [shape: bf16[2,64,128], index: 1, kind: input, shape index: {}]   ;;  %s1068_s2 = inlined_call_operand.vmem [shape: bf16[80,64], index: 2, kind: input, shape index: {}]   ;;  %s1069_s3 = inlined_call_operand.vmem [shape: bf16[16,40], index: 3, kind: input, shape index: {}]   ;;  %s1070_s4 = inlined_call_operand.vmem [shape: bf16[8,16], index: 4, kind: input, shape index: {}]   ;;  %s1071_s5 = inlined_call_operand.hbm [shape: f32[2,24,128], index: 5, kind: output, shape index: {}]  }
   0x1   :  { %10 = sst [smem:[#allocation3]] %s1066_s0 }
   0x2   :  { %11 = vsyncpa [#allocation5], 0 }
   0x3   :  { %13 = vsyncpa [#allocation5 + $0x1], 0  ;;  %s897_s20 = smov 0   ;;  %s899_s21 = smov 0  }
   0x4   :  { %s901_s22 = smov 0   ;;  %s903_s23 = smov 0  }
   0x5 LB: > { %s918_s0 = sadd.s32 4294967295, %s854_s23   ;;  %s648_s24 = sadd.s32 4294967294, %s854_s23   ;;  %s854_s23 = sphi %s903_s23, %s1079_s23   ;;  %s850_s22 = sphi %s901_s22, %s1078_s22   ;;  %s846_s21 = sphi %s899_s21, %s1077_s21   ;;  %s842_s20 = sphi %s897_s20, %s1076_s20  }
   0x6   : > { %s922_s25 = sadd.s32 1, %s854_s23   ;;  %s115_s26 = sadd.s32 1, %s850_s22 }
   0x7   : > { %s112_s27 = ssub.s32 %s854_s23, %s922_s25  ;;  %p125_p0 = scmp.ne.s32.totalorder %s850_s22, %s846_s21 }
   0x8   : > { %p113_p1 = scmp.eq.s32.totalorder %s112_s27, 0  ;;  %p126_p2 = scmp.eq.s32.totalorder %s918_s0, 1 }
   0x9   : > { %p131_p3 = scmp.ne.s32.totalorder %s846_s21, %s842_s20  ;;  %p132_p4 = scmp.eq.s32.totalorder %s648_s24, 1 }
   0xa   : > { %s933_s28 = scalar_select %p113_p1, %s850_s22, %s115_s26  }
   0xb   : > { %p935_p5 = por %p126_p2, %p125_p0  ;;  %p939_p6 = por %p132_p4, %p131_p3 }
   0xc   : > { %p651_p7 = scmp.ge.s32.totalorder %s854_s23, 1  ;;  %p167_p8 = scmp.lt.s32.totalorder %s854_s23, 3 }
   0xe   : > { %p168_p9 = pnand %p651_p7, %p167_p8 }
   0xf   : > { %p193_p10 = scmp.lt.s32.totalorder (!%p168_p9), %s918_s0, 1  ;;  %s199_s8 = sld [smem:[#allocation3]] (!%p168_p9) }
  0x10   : > { %171 = sbr.rel (%p168_p9) target bundleno = 1264 (0x4f0), region = 36  ;;  %s859_s11 = smov (!%p168_p9), 2  }
  0x11   : > { %s860_s12 = smov (!%p168_p9), 127   ;;  %s861_s13 = smov (!%p168_p9), 126  }
  0x12   : > { %s190_s14 = sand.u32 (!%p168_p9), 1, %s846_s21   ;;  %s728_s17 = smul.u32 (!%p168_p9), 24, %s918_s0 }
  0x13   : > { %s727_s15 = smul.u32 (!%p168_p9), 24, %s190_s14 }
  0x14   : > { %s582_s24 = scalar_lea.hbm (!%p168_p9), %s1071_s5, %s728_s17 }
  0x15   : > { %s194_s6 = scalar_select %p193_p10, %s918_s0, 1  ;;  %v713_v4 = vld [vmem:[%s1068_s2] sm:$0xff]  ;;  %v715_v5 = vld [vmem:[%s1068_s2 + $0x10] sm:$0xff]  ;;  %vm267_vm0 = vcmask 523264   ;;  %v716_v6 = vld [vmem:[%s1068_s2 + $0x18] sm:$0xff]  ;;  %vm346_vm1 = vcmask 1043456   ;;  %v393_v53 = vlaneseq  ;;  %v395_v62 = vstv %s199_s8 }
  0x16   : > { %v714_v7 = vld [vmem:[%s1068_s2 + $0x8] sm:$0xff]  ;;  %v717_v8 = vld [vmem:[%s1068_s2 + $0x20] sm:$0xff]  ;;  %vm342_vm2 = vcmask 326656   ;;  %vm376_vm3 = vcmask 130048   ;;  %s702_s9 = sadd.s32 4294967295, %s199_s8  ;;  %v856_v56 = vmov 0.0  }
  0x17   : > { %s708_s7 = sshll.u32 %s194_s6, 5  ;;  %v718_v38 = vld [vmem:[%s1069_s3] sm:$0xff]  ;;  %v971_v54 = vand.u32 127, %v393_v53  ;;  %v400_v55 = vstv %s702_s9  ;;  %v857_v61 = vmov 0   ;;  %s1026_s16 = scalar_lea.vmem [#allocation4], %s727_s15 }
  0x18   : > { %s197_s10 = scalar_lea.vmem %s1067_s1, %s708_s7  ;;  %v375_v52 = vld [vmem:[%s1070_s4] sm:$0xf]  ;;  %776 = vset.pattern.permute.xlu0 %v857_v61  ;;  %777 = vset.pattern.permute.xlu2 %v857_v61  ;;  %s583_s26 = sshll.u32 %s1026_s16, 4  ;;  %s584_s26 = int_to_ptr.vmem [resolvable:$true] %s583_s26 }
  0x19   : > { %v712_v0 = vld [vmem:[%s197_s10 + $0x18] sm:$0xff]  ;;  %v711_v1 = vld [vmem:[%s197_s10 + $0x10] sm:$0xff]  ;;  %v710_v2 = vld [vmem:[%s197_s10 + $0x8] sm:$0xff]  ;;  %vm401_vm4 = vcmp.eq.s32.totalorder %v971_v54, %v400_v55  ;;  %vm975_vm5 = vcmp.lt.s32.totalorder %v971_v54, %v395_v62  ;;  %vm409_vm6 = vcmp.ge.s32.totalorder %v971_v54, 1  ;;  %vm427_vm7 = vcmp.ge.s32.totalorder %v971_v54, 2  ;;  %s585_s27 = sshll.u32 %s582_s24, 4  ;;  %s586_s27 = int_to_ptr.hbm [resolvable:$true] %s585_s27 }
  0x1a   : > { %287 = vmatpush.bf16.msra.mxu0 %v712_v0  ;;  %719 = vmatpush.bf16.msra.mxu2 %v712_v0  ;;  %v709_v3 = vld [vmem:[%s197_s10] sm:$0xff]  ;;  %v703_v57 = vsel %vm401_vm4, 1.0, %v856_v56  ;;  %s858_s10 = smov 1   ;;  %vm433_vm8 = vcmp.lt.s32.totalorder %v971_v54, 126  ;;  %vm420_vm9 = vcmp.lt.s32.totalorder %v971_v54, 127  ;;  %s571_s0 = scalar_lea.sflag [#allocation5], %s190_s14 }
  0x1b   : > { %720 = vmatpush.bf16.msra.mxu3 %v712_v0  ;;  %s806_s6 = sshra.s32 %s586_s27, 4  ;;  %s807_s6 = int_to_ptr.hbm [resolvable:$true] %s806_s6 }
  0x1c   : > { %s808_s7 = scalar_lea.hbm %s807_s6, 24  ;;  %p813_p0 = scmp.lt.s32.totalorder %s807_s6, %s1071_s5 }
  0x1d   : > { %p809_p11 = scmp.ne.s32.totalorder %s807_s6, %s808_s7 }
  0x1e   : > { %288 = vmatpush.bf16.msra.mxu0 %v711_v1  ;;  %721 = vmatpush.bf16.msra.mxu2 %v711_v1 }
  0x1f   : > { %722 = vmatpush.bf16.msra.mxu3 %v711_v1  ;;  %p810_p12 = pnand %p809_p11, %p935_p5 }
  0x21   : > { %p811_p13 = pneg %p810_p12 }
  0x22   : > { %289 = vmatpush.bf16.msra.mxu0 %v710_v2  ;;  %723 = vmatpush.bf16.msra.mxu2 %v710_v2 }
  0x23   : > { %724 = vmatpush.bf16.msra.mxu3 %v710_v2 }
  0x26   : > { %290 = vmatpush.bf16.msra.mxu0 %v709_v3  ;;  %725 = vmatpush.bf16.msra.mxu2 %v709_v3 }
  0x27   : > { %726 = vmatpush.bf16.msra.mxu3 %v709_v3 }
  0x29   : > { %690 = vmatmul.msk.bf16.vlgmr.msra.gmra.mxu0 %vm267_vm0, %v713_v4  ;;  %692 = vmatmul.msk.bf16.vlgmr.msra.gmra.mxu2 %vm267_vm0, %v715_v5 }
  0x2a   : > { %693 = vmatmul.msk.bf16.vlgmr.msra.gmra.mxu3 %vm267_vm0, %v716_v6 }
  0x39   : > { %691 = vmatmul.msk.bf16.gmra.mxu0 %vm267_vm0, %v714_v7 }
  0x3a   : > { %694 = vmatmul.msk.bf16.gmra.mxu3 %vm267_vm0, %v717_v8 }
  0xa6   : > { %v292_v9 = vpop.f32.mrf.mxu0 }
  0xa7   : > { %v317_v30 = vmul.f32 %v292_v9, %v292_v9 }
  0xac   : > { %v302_v15 = vpop.f32.mrf.mxu2 }
  0xad   : > { %v307_v10 = vpop.f32.mrf.mxu3  ;;  %v321_v16 = vmul.f32 %v302_v15, %v302_v15 }
  0xae   : > { %v294_v11 = vpop.f32.mrf.mxu0  ;;  %v323_v33 = vmul.f32 %v307_v10, %v307_v10 }
  0xaf   : > { %v318_v31 = vmul.f32 %v294_v11, %v294_v11 }
  0xb1   : > { %v328_v36 = vadd.f32 %v323_v33, %v318_v31 }
  0xb4   : > { %v304_v21 = vpop.f32.mrf.mxu2 }
  0xb5   : > { %v309_v12 = vpop.f32.mrf.mxu3  ;;  %v322_v26 = vmul.f32 %v304_v21, %v304_v21 }
  0xb6   : > { %v297_v13 = vpop.f32.mrf.mxu0  ;;  %v324_v27 = vmul.f32 %v309_v12, %v309_v12 }
  0xb7   : > { %v319_v23 = vmul.f32 %v297_v13, %v297_v13  ;;  %v327_v34 = vadd.f32 %v322_v26, %v317_v30 }
  0xb9   : > { %v329_v32 = vadd.f32 %v324_v27, %v319_v23  ;;  %v332_v37 = vpack.c.bf16 %v328_v36, %v327_v34 }
  0xbd   : > { %v312_v14 = vpop.f32.mrf.mxu3 }
  0xbe   : > { %v299_v17 = vpop.f32.mrf.mxu0  ;;  %v325_v24 = vmul.f32 %v312_v14, %v312_v14 }
  0xbf   : > { %v320_v20 = vmul.f32 %v299_v17, %v299_v17 }
  0xc1   : > { %v330_v28 = vadd.f32 %v325_v24, %v320_v20 }
  0xc3   : > { %v333_v35 = vpack.c.bf16 %v330_v28, %v329_v32 }
  0xc5   : > { %v314_v18 = vpop.f32.mrf.mxu3 }
  0xc6   : > { %v326_v19 = vmul.f32 %v314_v18, %v314_v18  ;;  %v701_v18 = vsel %vm975_vm5, 1.0, %v856_v56 }
  0xc8   : > { %v331_v22 = vadd.f32 %v326_v19, %v321_v16 }
  0xca   : > { %v334_v25 = vpack.c.bf16 %v331_v22, %v331_v22 }
  0xcc   : > { %v348_v29 = vsel %vm346_vm1, %v334_v25, 0 }
  0xcd   : > { %355 = vmatpush.bf16.msra.mxu1 %v348_v29 }
  0xd1   : > { %356 = vmatpush.bf16.msra.mxu1 %v333_v35 }
  0xd5   : > { %357 = vmatpush.bf16.msra.mxu1 %v332_v37 }
  0xd8   : > { %699 = vmatmul.msk.bf16.vlgmr.msra.gmra.mxu1 %vm342_vm2, %v718_v38 }
 0x155   : > { %v359_v39 = vpop.f32.mrf.mxu1 }
 0x156   : > { %v364_v40 = vmax.f32 %v359_v39, 1e-10 }
 0x158   : > { %778 = vlog2.f32 %v364_v40 }
 0x15d   : > { %v361_v41 = vpop.f32.mrf.mxu1 }
 0x15e   : > { %v365_v42 = vmax.f32 %v361_v41, 1e-10  ;;  %v779_v43 = vpop.eup %778 }
 0x15f   : > { %v367_v44 = vmul.f32 0.6931472, %v779_v43 }
 0x160   : > { %780 = vlog2.f32 %v365_v42 }
 0x161   : > { %v370_v46 = vmul.f32 0.4342945, %v367_v44 }
 0x163   : > { %v372_v50 = vmul.f32 10.0, %v370_v46 }
 0x166   : > { %v781_v45 = vpop.eup %780 }
 0x167   : > { %v369_v47 = vmul.f32 0.6931472, %v781_v45 }
 0x169   : > { %v371_v48 = vmul.f32 0.4342945, %v369_v47 }
 0x16b   : > { %v373_v49 = vmul.f32 10.0, %v371_v48 }
 0x16d   : > { %v374_v51 = vpack.c.bf16 %v373_v49, %v372_v50 }
 0x16f   : > { %387 = vmatpush.bf16.msrb.mxu2 %v374_v51 }
 0x172   : > { %700 = vmatmul.msk.bf16.vlgmr.msrb.gmra.mxu2 %vm376_vm3, %v375_v52 }
 0x1f5   : > { %v389_v58 = vpop.f32.mrf.mxu2 }
 0x1f6   : > { %v404_v59 = vmul.f32 %v703_v57, %v389_v58 }
 0x1f8   : > { %405 = vadd.xlane.f32.xlu0 %v404_v59 }
 0x1fd   : > { %v391_v60 = vpop.f32.mrf.mxu2 }
 0x26b   : > { %v406_v0 = vpop.xlane.xlu0 %405 }
 0x26c   : > { %v981_v1 = vsel %vm975_vm5, %v389_v58, %v406_v0 }
 0x26d   : > { %410 = vrot.lane.b32.xlu2 %v981_v1, %s858_s10  ;;  %428 = vrot.lane.b32.xlu1 %v981_v1, %s859_s11  ;;  %v501_v21 = vmul.f32 %v701_v18, %v981_v1 }
 0x26e   : > { %416 = vperm.xlu0 %776, %v981_v1  }
 0x275   : > { %421 = vrot.lane.b32.xlu2 %v981_v1, %s860_s12  ;;  %434 = vrot.lane.b32.xlu1 %v981_v1, %s861_s13 }
 0x2c7   : > { %v411_v2 = vpop.permute.xlu2 %410 }
 0x2cf   : > { %v422_v5 = vpop.permute.xlu2 %421 }
 0x2d0   : > { %v425_v11 = vsel %vm420_vm9, %v422_v5, %v406_v0 }
 0x2df   : > { %v429_v3 = vpop.permute.xlu1 %428 }
 0x2e0   : > { %v417_v4 = vpop.permute.xlu0 %416 }
 0x2e1   : > { %v419_v7 = vsel %vm409_vm6, %v411_v2, %v417_v4  ;;  %v432_v8 = vsel %vm427_vm7, %v429_v3, %v417_v4 }
 0x2e2   : > { %v426_v12 = vsub.f32 %v425_v11, %v419_v7 }
 0x2e7   : > { %v435_v6 = vpop.permute.xlu1 %434 }
 0x2e8   : > { %v438_v9 = vsel %vm433_vm8, %v435_v6, %v406_v0 }
 0x2e9   : > { %v439_v10 = vsub.f32 %v438_v9, %v432_v8 }
 0x2eb   : > { %v440_v13 = vmul.f32 2.0, %v439_v10 }
 0x2ed   : > { %v441_v14 = vadd.f32 %v440_v13, %v426_v12 }
 0x2ef   : > { %v442_v15 = vmul.f32 0.1, %v441_v14 }
 0x2f1   : > { %v443_v16 = vmul.f32 %v703_v57, %v442_v15 }
 0x2f3   : > { %444 = vadd.xlane.f32.xlu1 %v443_v16 }
 0x366   : > { %v445_v17 = vpop.xlane.xlu1 %444 }
 0x367   : > { %v446_v19 = vsel %vm975_vm5, %v442_v15, %v445_v17 }
 0x368   : > { %455 = vrot.lane.b32.xlu0 %v446_v19, %s860_s12  ;;  %451 = vperm.xlu2 %777, %v446_v19   ;;  %v524_v20 = vmul.f32 %v701_v18, %v446_v19 }
 0x36a   : > { %525 = vadd.xlane.f32.xlu1 %v524_v20 }
 0x370   : > { %459 = vrot.lane.b32.xlu2 %v446_v19, %s859_s11 }
 0x378   : > { %462 = vrot.lane.b32.xlu2 %v446_v19, %s861_s13 }
 0x380   : > { %447 = vrot.lane.b32.xlu2 %v446_v19, %s858_s10  ;;  %s812_s10 = scalar_lea.hbm %s1071_s5, 48 }
 0x381   : > { %p814_p1 = scmp.lt.s32.totalorder %s812_s10, %s808_s7 }
 0x383   : > { %p815_p2 = por %p814_p1, %p813_p0 }
 0x385   : > { %p816_p3 = pnand %p815_p2, %p811_p13 }
 0x392   : > { %502 = vadd.xlane.f32.xlu0 %v501_v21 }
 0x3a9   : > { %469 = vadd.xlane.f32.xlu2 %v701_v18 }
 0x3c2   : > { %v452_v22 = vpop.permute.xlu2 %451 }
 0x3ca   : > { %v460_v23 = vpop.permute.xlu2 %459 }
 0x3cb   : > { %v461_v26 = vsel %vm427_vm7, %v460_v23, %v452_v22 }
 0x3d2   : > { %v463_v24 = vpop.permute.xlu2 %462 }
 0x3d3   : > { %v464_v25 = vsel %vm433_vm8, %v463_v24, %v445_v17 }
 0x3d4   : > { %v465_v27 = vsub.f32 %v464_v25, %v461_v26 }
 0x3d6   : > { %v466_v32 = vmul.f32 2.0, %v465_v27 }
 0x3da   : > { %v456_v28 = vpop.permute.xlu0 %455  ;;  %v448_v29 = vpop.permute.xlu2 %447 }
 0x3db   : > { %v457_v30 = vsel %vm420_vm9, %v456_v28, %v445_v17  ;;  %v454_v31 = vsel %vm409_vm6, %v448_v29, %v452_v22 }
 0x3dc   : > { %v458_v33 = vsub.f32 %v457_v30, %v454_v31 }
 0x3dd   : > { %v526_v50 = vpop.xlane.xlu1 %525 }
 0x3de   : > { %v467_v34 = vadd.f32 %v466_v32, %v458_v33 }
 0x3e0   : > { %v468_v35 = vmul.f32 0.1, %v467_v34 }
 0x3e2   : > { %v547_v36 = vmul.f32 %v701_v18, %v468_v35 }
 0x3e4   : > { %548 = vadd.xlane.f32.xlu1 %v547_v36 }
 0x405   : > { %v503_v47 = vpop.xlane.xlu0 %502 }
 0x41c   : > { %v470_v37 = vpop.xlane.xlu2 %469 }
 0x41d   : > { %782 = vrcp.f32 %v470_v37  ;;  %v482_v40 = vand.u32 2147483648, %v470_v37  ;;  %vm476_vm10 = vweird.f32 %v470_v37  ;;  %v480_v42 = vand.u32 2147483647, %v470_v37 }
 0x41e   : > { %v704_v63 = vadd.f32 -1.0, %v470_v37 }
 0x41f   : > { %v483_v44 = vor.u32 1.1754944e-38, %v482_v40  ;;  %vm481_vm13 = vcmp.eq.f32.partialorder %v480_v42, 8.507059e+37 }
 0x420   : > { %v486_v0 = vmax.f32 %v704_v63, 1.0 }
 0x422   : > { %784 = vrcp.f32 %v486_v0  ;;  %vm492_vm14 = vweird.f32 %v486_v0  ;;  %v498_v5 = vand.u32 2147483648, %v486_v0  ;;  %v496_v7 = vand.u32 2147483647, %v486_v0 }
 0x423   : > { %v783_v38 = vpop.eup %782 }
 0x424   : > { %v472_v39 = vmul.f32 %v783_v38, %v470_v37  ;;  %vm477_vm11 = vweird.f32 %v783_v38  ;;  %v499_v8 = vor.u32 1.1754944e-38, %v498_v5  ;;  %vm497_vm1 = vcmp.eq.f32.partialorder %v496_v7, 8.507059e+37 }
 0x425   : > { %vm478_vm12 = vmor %vm476_vm10, %vm477_vm11 }
 0x426   : > { %v473_v41 = vsub.f32 1.0, %v472_v39 }
 0x428   : > { %v474_v43 = vmul.f32 %v783_v38, %v473_v41 }
 0x42a   : > { %v475_v45 = vadd.f32 %v783_v38, %v474_v43 }
 0x42c   : > { %v479_v46 = vsel %vm478_vm12, %v783_v38, %v475_v45 }
 0x42d   : > { %v484_v48 = vsel %vm481_vm13, %v483_v44, %v479_v46 }
 0x42e   : > { %v504_v49 = vmul.f32 %v503_v47, %v484_v48  ;;  %v527_v52 = vmul.f32 %v526_v50, %v484_v48 }
 0x430   : > { %v505_v51 = vsub.f32 %v981_v1, %v504_v49  ;;  %v528_v55 = vsub.f32 %v446_v19, %v527_v52  ;;  %v785_v1 = vpop.eup %784 }
 0x431   : > { %v488_v2 = vmul.f32 %v785_v1, %v486_v0  ;;  %vm493_vm15 = vweird.f32 %v785_v1 }
 0x432   : > { %v506_v53 = vmul.f32 %v701_v18, %v505_v51  ;;  %v529_v56 = vmul.f32 %v701_v18, %v528_v55  ;;  %vm494_vm0 = vmor %vm492_vm14, %vm493_vm15 }
 0x433   : > { %v489_v3 = vsub.f32 1.0, %v488_v2 }
 0x434   : > { %v507_v54 = vmul.f32 %v506_v53, %v506_v53  ;;  %v530_v57 = vmul.f32 %v529_v56, %v529_v56 }
 0x435   : > { %v490_v4 = vmul.f32 %v785_v1, %v489_v3 }
 0x436   : > { %508 = vadd.xlane.f32.xlu1 %v507_v54 }
 0x437   : > { %v491_v6 = vadd.f32 %v785_v1, %v490_v4 }
 0x439   : > { %v495_v9 = vsel %vm494_vm0, %v785_v1, %v491_v6 }
 0x43a   : > { %v500_v10 = vsel %vm497_vm1, %v499_v8, %v495_v9 }
 0x43e   : > { %531 = vadd.xlane.f32.xlu1 %v530_v57 }
 0x457   : > { %v549_v58 = vpop.xlane.xlu1 %548 }
 0x458   : > { %v550_v59 = vmul.f32 %v549_v58, %v484_v48 }
 0x45a   : > { %v1020_v60 = vsub.f32 %v468_v35, %v550_v59 }
 0x45c   : > { %v552_v61 = vmul.f32 %v701_v18, %v1020_v60 }
 0x45e   : > { %v553_v62 = vmul.f32 %v552_v61, %v552_v61 }
 0x460   : > { %554 = vadd.xlane.f32.xlu2 %v553_v62 }
 0x4a9   : > { %v509_v11 = vpop.xlane.xlu1 %508 }
 0x4aa   : > { %v510_v12 = vmul.f32 %v509_v11, %v500_v10 }
 0x4ac   : > { %v511_v13 = vadd.f32 1e-08, %v510_v12 }
 0x4ae   : > { %786 = vrsqrt.f32 %v511_v13  ;;  %vm518_vm3 = vweird.f32 %v511_v13 }
 0x4b1   : > { %v532_v14 = vpop.xlane.xlu1 %531 }
 0x4b2   : > { %v533_v15 = vmul.f32 %v532_v14, %v500_v10 }
 0x4b4   : > { %v787_v16 = vpop.eup %786  ;;  %v534_v17 = vadd.f32 1e-08, %v533_v15 }
 0x4b5   : > { %v513_v18 = vmul.f32 %v787_v16, %v511_v13  ;;  %vm519_vm2 = vweird.f32 %v787_v16 }
 0x4b6   : > { %788 = vrsqrt.f32 %v534_v17  ;;  %vm520_vm4 = vmor %vm518_vm3, %vm519_vm2  ;;  %vm541_vm6 = vweird.f32 %v534_v17 }
 0x4b7   : > { %v514_v19 = vmul.f32 %v787_v16, %v513_v18 }
 0x4b9   : > { %v515_v20 = vmul.f32 0.5, %v514_v19 }
 0x4bb   : > { %v516_v21 = vsub.f32 1.5, %v515_v20 }
 0x4bc   : > { %v789_v22 = vpop.eup %788 }
 0x4bd   : > { %v517_v23 = vmul.f32 %v787_v16, %v516_v21  ;;  %v536_v24 = vmul.f32 %v789_v22, %v534_v17  ;;  %vm542_vm5 = vweird.f32 %v789_v22 }
 0x4be   : > { %vm543_vm7 = vmor %vm541_vm6, %vm542_vm5 }
 0x4bf   : > { %v521_v25 = vsel %vm520_vm4, %v787_v16, %v517_v23  ;;  %v537_v26 = vmul.f32 %v789_v22, %v536_v24 }
 0x4c0   : > { %v522_v27 = vmul.f32 %v521_v25, %v505_v51 }
 0x4c1   : > { %v538_v28 = vmul.f32 0.5, %v537_v26 }
 0x4c2   : > { %523 = vst [vmem:[%s1026_s16] sm:$0xff] %v522_v27 }
 0x4c3   : > { %v539_v29 = vsub.f32 1.5, %v538_v28 }
 0x4c5   : > { %v540_v30 = vmul.f32 %v789_v22, %v539_v29 }
 0x4c7   : > { %v544_v31 = vsel %vm543_vm7, %v789_v22, %v540_v30 }
 0x4c8   : > { %v545_v32 = vmul.f32 %v544_v31, %v528_v55 }
 0x4ca   : > { %546 = vst [vmem:[%s1026_s16 + $0x8] sm:$0xff] %v545_v32 }
 0x4d3   : > { %v555_v33 = vpop.xlane.xlu2 %554 }
 0x4d4   : > { %v556_v34 = vmul.f32 %v555_v33, %v500_v10 }
 0x4d6   : > { %v557_v35 = vadd.f32 1e-08, %v556_v34 }
 0x4d8   : > { %790 = vrsqrt.f32 %v557_v35  ;;  %vm564_vm9 = vweird.f32 %v557_v35 }
 0x4de   : > { %v791_v36 = vpop.eup %790 }
 0x4df   : > { %v559_v37 = vmul.f32 %v791_v36, %v557_v35  ;;  %vm565_vm8 = vweird.f32 %v791_v36 }
 0x4e0   : > { %vm566_vm10 = vmor %vm564_vm9, %vm565_vm8 }
 0x4e1   : > { %v560_v38 = vmul.f32 %v791_v36, %v559_v37 }
 0x4e3   : > { %v561_v39 = vmul.f32 0.5, %v560_v38 }
 0x4e5   : > { %v562_v40 = vsub.f32 1.5, %v561_v39 }
 0x4e7   : > { %v563_v41 = vmul.f32 %v791_v36, %v562_v40 }
 0x4e9   : > { %v567_v42 = vsel %vm566_vm10, %v791_v36, %v563_v41 }
 0x4ea   : > { %v568_v43 = vmul.f32 %v567_v42, %v1020_v60 }
 0x4ec   : > { %569 = vst [vmem:[%s1026_s16 + $0x10] sm:$0xff] %v568_v43 }
 0x4ed   : > { %819 = shalt.err (!%p816_p3)
}
 0x4ee   : > { %s862_s13 = smov 128   ;;  %s863_s14 = smov 8  }
 0x4ef   : > { %729 = dma.vmem_to_hbm [thread:$0]  (%p935_p5), %s584_s26, 384, %s586_s27, %s571_s0, %s862_s13, %s862_s13, %s863_s14  }
 0x4f0 PF: > { %p735_p4 = scmp.ge.s32.totalorder %s854_s23, 2  ;;  %s600_s15 = sand.u32 1, %s842_s20  }
 0x4f1   : > { %s601_s16 = scalar_lea.sflag [#allocation5], %s600_s15 }
 0x4f2   : > { %p732_p7 = pnand %p735_p4, %p939_p6 }
 0x4f4   : > { %p733_p8 = pneg %p732_p7 }
 0x4f6   : > { %837 = dma.done.wait (%p733_p8), %s601_s16, 384  }
 0x4f7   : > { %839 = vsyncadd (%p733_p8), %s601_s16, 4294966912  ;;  %p16_p9 = scmp.ge.s32.totalorder %s922_s25, 4   ;;  %s1076_s20 = smov %s846_s21 }
 0x4f8   : > { %s1077_s21 = smov %s850_s22  ;;  %s1078_s22 = smov %s933_s28 }
 0x4f9   : > { %s1079_s23 = smov %s922_s25  ;;  %18 = sbr.rel (!%p16_p9) target bundleno = 5 (0x5), region = 71 }
 0x4fe   :  { %607 = vsyncpa [#allocation5], 1 }
 0x4ff   :  { %609 = vsyncpa [#allocation5 + $0x1], 1 }

</bundles_post_ra>
